<compile_context>
chip_gen: v7x
topology: tpu7x:2x2x1
jax: 0.10.0
libtpu: 0.0.40
codegen_flags: <defaults>
</compile_context>

<pallas_src>
import functools

import jax
import jax.numpy as jnp
from jax import lax
from jax.experimental import pallas as pl
from jax.experimental.pallas import tpu as pltpu


def _round_up(n, m):
    return ((n + m - 1) // m) * m


def _pack_weights(params, F, Fe, H):
    """All weight pieces in one lane-dense (rows, 128) bf16 buffer.

    row block 0 (rows [0, r0)):   [ We1_src | We1_tgt | Wn1_x | We2 ]
    row block 1 (rows [r0, ...)): [ Wn1_agg | Wn2 | We1_ea | pad   ]
    """
    assert 4 * H <= 128 and (H + F + H) <= 128, "lane budget exceeded"
    bf16 = jnp.bfloat16
    we1, wn1 = params["we1"], params["wn1"]
    r0 = _round_up(max(F, H), 16)            # bf16 (16,128) tile row alignment
    r1 = _round_up(max(H, Fe), 16)
    w = jnp.zeros((r0 + r1, 128), bf16)
    # block 0 — the first three pieces are contiguous so the x-LHS matmul fuses.
    w = w.at[0:F, 0:H].set(we1[:F].astype(bf16))                    # We1_src
    w = w.at[0:F, H:2 * H].set(we1[F:2 * F].astype(bf16))           # We1_tgt
    w = w.at[0:F, 2 * H:3 * H].set(wn1[:F].astype(bf16))            # Wn1_x
    w = w.at[0:H, 3 * H:4 * H].set(params["we2"].astype(bf16))      # We2
    # block 1
    w = w.at[r0:r0 + H, 0:H].set(wn1[F:].astype(bf16))              # Wn1_agg
    w = w.at[r0:r0 + H, H:H + F].set(params["wn2"].astype(bf16))    # Wn2
    w = w.at[r0:r0 + Fe, H + F:H + F + H].set(we1[2 * F:].astype(bf16))  # We1_ea
    return w, r0


def _pack_biases(params, F, H):
    """All 4 biases lane-packed into a single (1, 128) f32 row."""
    assert 3 * H + F <= 128, "lane budget exceeded"
    b = jnp.zeros((1, 128), jnp.float32)
    b = b.at[0, 0:H].set(params["be1"].reshape(-1))
    b = b.at[0, H:2 * H].set(params["be2"].reshape(-1))
    b = b.at[0, 2 * H:3 * H].set(params["bn1"].reshape(-1))
    b = b.at[0, 3 * H:3 * H + F].set(params["bn2"].reshape(-1))
    return b


def _gcl_kernel(idx_ref, xe_ref, w_ref, b_ref, x_out_ref, ef_out_ref,
                *, N, E, F, Fe, H, ea_off, w_r1):
    f32, bf16 = jnp.float32, jnp.bfloat16

    x = xe_ref[0:N, 0:F]                         # (N, F)  f32
    ea = xe_ref[ea_off:ea_off + E, 0:Fe]         # (E, Fe) f32
    x_b = x.astype(bf16)
    ea_b = ea.astype(bf16)

    row = idx_ref[0:1, :]                        # (1, E) i32, lane-major
    col = idx_ref[1:2, :]                        # (1, E) i32

    # --- all x-LHS matmuls fused into one lane-packed (F, 3H) MXU push -------
    xh = jnp.dot(x_b, w_ref[0:F, 0:3 * H], preferred_element_type=f32)  # (N, 3H)
    xs = xh[:, 0:H]                              # x @ We1_src  (N, H) f32
    xt = xh[:, H:2 * H]                          # x @ We1_tgt  (N, H) f32
    xn = xh[:, 2 * H:3 * H]                      # x @ Wn1_x    (N, H) f32

    # --- one-hot masks, lane-major compares (VPU only, no transpose) ---------
    ids_n = lax.broadcasted_iota(jnp.int32, (N, E), 0)
    S = (ids_n == row).astype(bf16)              # (N, E): S[n, e] = (row[e] == n)
    ids_2n = lax.broadcasted_iota(jnp.int32, (2 * N, E), 0)
    target = jnp.where(ids_2n < N, row, col + N)
    M = (ids_2n == target).astype(bf16)          # (2N, E) = [S ; C]

    # --- fused gather:  M^T @ [xs; xt] == xs[row] + xt[col]  (one MXU push) ---
    A = jnp.concatenate([xs, xt], axis=0).astype(bf16)       # (2N, H)
    sc = lax.dot_general(M, A, (((0,), (0,)), ((), ())),
                         preferred_element_type=f32)         # (E, H) f32
    # TODO(synk): inspect the lowered MLIR for an XLU vxpose on this
    # dim-0-contraction; if present, switch to pl.dot(M, A, trans_a=True).

    # --- bias slices (lane offsets of the packed (1,128) row) ----------------
    b_e1 = b_ref[0:1, 0:H]
    b_e2 = b_ref[0:1, H:2 * H]
    b_n1 = b_ref[0:1, 2 * H:3 * H]
    b_n2 = b_ref[0:1, 3 * H:3 * H + F]

    # --- edge model -----------------------------------------------------------
    w_ea = w_ref[w_r1:w_r1 + Fe, H + F:H + F + H]            # (Fe, H)
    h = sc + jnp.dot(ea_b, w_ea, preferred_element_type=f32) + b_e1
    h = jnp.maximum(h, 0.0)
    w_e2 = w_ref[0:H, 3 * H:4 * H]                           # (H, H)
    edge_feat = jnp.dot(h.astype(bf16), w_e2, preferred_element_type=f32) + b_e2
    edge_feat = jnp.maximum(edge_feat, 0.0)                  # (E, H) f32

    # --- node model: scatter-sum over `row` is a plain (N,E)@(E,H) matmul ----
    agg = jnp.dot(S, edge_feat.astype(bf16), preferred_element_type=f32)  # (N, H)
    w_n_agg = w_ref[w_r1:w_r1 + H, 0:H]                      # (H, H)
    g = xn + jnp.dot(agg.astype(bf16), w_n_agg, preferred_element_type=f32) + b_n1
    g = jnp.maximum(g, 0.0)
    w_n2 = w_ref[w_r1:w_r1 + H, H:H + F]                     # (H, F)
    x_out = jnp.dot(g.astype(bf16), w_n2, preferred_element_type=f32) + b_n2 + x

    x_out_ref[...] = x_out
    ef_out_ref[...] = edge_feat


@jax.jit
def gcl_forward(x, edge_index, edge_attr, params):
    N, F = x.shape
    E = edge_index.shape[1]
    Fe = edge_attr.shape[1]
    H = params["we2"].shape[1]

    # row/col as a single (2, E) i32 array (1 DMA descriptor).
    idx = edge_index.astype(jnp.int32).reshape(2, E)

    # x and edge_attr row-stacked into one f32 buffer (1 DMA descriptor).
    ea_off = _round_up(N, 8)
    xe_rows = _round_up(ea_off + E, 8)
    xe_buf = jnp.zeros((xe_rows, max(F, Fe)), jnp.float32)
    xe_buf = xe_buf.at[0:N, 0:F].set(x)
    xe_buf = xe_buf.at[ea_off:ea_off + E, 0:Fe].set(edge_attr)

    # all weights in one lane-dense bf16 buffer, all biases in one f32 row.
    w_buf, w_r1 = _pack_weights(params, F, Fe, H)
    b_buf = _pack_biases(params, F, H)

    kernel = functools.partial(_gcl_kernel, N=N, E=E, F=F, Fe=Fe, H=H,
                               ea_off=ea_off, w_r1=w_r1)

    vmem = pl.BlockSpec(memory_space=pltpu.MemorySpace.VMEM)
    x_out, edge_feat = pl.pallas_call(
        kernel,
        out_shape=(jax.ShapeDtypeStruct((N, F), jnp.float32),
                   jax.ShapeDtypeStruct((E, H), jnp.float32)),
        in_specs=[vmem] * 4,
        out_specs=(vmem, vmem),
    )(idx, xe_buf, w_buf, b_buf)
    return x_out, edge_feat


def _reference(x, edge_index, edge_attr, params):
    """Pure-JAX (f32) reference of the same forward pass."""
    row, col = edge_index[0], edge_index[1]
    edge_in = jnp.concatenate([x[row], x[col], edge_attr], axis=1)
    h = jax.nn.relu(edge_in @ params["we1"] + params["be1"])
    edge_feat = jax.nn.relu(h @ params["we2"] + params["be2"])
    agg = jax.ops.segment_sum(edge_feat, row, num_segments=x.shape[0])
    node_in = jnp.concatenate([x, agg], axis=1)
    g = jax.nn.relu(node_in @ params["wn1"] + params["bn1"])
    x_out = g @ params["wn2"] + params["bn2"] + x
    return x_out, edge_feat


def _make_params(key, feat_dim, hidden_dim, edge_attr_dim):
    ks = jax.random.split(key, 4)

    def lin(k, fan_in, fan_out):
        scale = 1.0 / jnp.sqrt(fan_in)
        return jax.random.uniform(k, (fan_in, fan_out), jnp.float32, -scale, scale)

    return {
        "we1": lin(ks[0], 2 * feat_dim + edge_attr_dim, hidden_dim),
        "be1": jnp.zeros((1, hidden_dim), jnp.float32),
        "we2": lin(ks[1], hidden_dim, hidden_dim),
        "be2": jnp.zeros((1, hidden_dim), jnp.float32),
        "wn1": lin(ks[2], feat_dim + hidden_dim, hidden_dim),
        "bn1": jnp.zeros((1, hidden_dim), jnp.float32),
        "wn2": lin(ks[3], hidden_dim, feat_dim),
        "bn2": jnp.zeros((1, feat_dim), jnp.float32),
    }


if __name__ == "__main__":
    key = jax.random.PRNGKey(0)
    k_x, k_ea, k_p = jax.random.split(key, 3)

    N, F, H, FE = 8, 32, 32, 4

    # Fully connected graph without self-loops (fixed number of nodes, as in tbg).
    rows, cols = [], []
    for i in range(N):
        for j in range(N):
            if i != j:
                rows.append(i)
                cols.append(j)
    edge_index = jnp.array([rows, cols], dtype=jnp.int32)   # (2, E), E = 56
    E = edge_index.shape[1]

    x = jax.random.normal(k_x, (N, F), jnp.float32)
    edge_attr = jax.random.normal(k_ea, (E, FE), jnp.float32)
    params = _make_params(k_p, F, H, FE)

    x_out, edge_feat = gcl_forward(x, edge_index, edge_attr, params)
    jax.block_until_ready((x_out, edge_feat))

    x_ref, ef_ref = _reference(x, edge_index, edge_attr, params)
    # bf16 MXU operands (f32 accumulation) -> tolerance loosened vs pure f32.
    assert jnp.allclose(edge_feat, ef_ref, atol=5e-2, rtol=5e-2), \
        float(jnp.max(jnp.abs(edge_feat - ef_ref)))
    assert jnp.allclose(x_out, x_ref, atol=1e-1, rtol=5e-2), \
        float(jnp.max(jnp.abs(x_out - x_ref)))

    print("KERNEL_OK")
</pallas_src>

<mosaic_0001>
module attributes {stable_mosaic.version = 11 : i64} {
  func.func @_gcl_kernel(%arg0: memref<2x56xi32, #tpu.memory_space<vmem>>, %arg1: memref<64x32xf32, #tpu.memory_space<vmem>>, %arg2: memref<64x128xbf16, #tpu.memory_space<vmem>>, %arg3: memref<1x128xf32, #tpu.memory_space<vmem>>, %arg4: memref<8x32xf32, #tpu.memory_space<vmem>>, %arg5: memref<56x32xf32, #tpu.memory_space<vmem>>) attributes {dimension_semantics = [], scalar_prefetch = 0 : i64, scratch_operands = 0 : i64, tpu.core_type = #tpu.core_type<tc>} {
    %c0 = arith.constant 0 : index
    %c0_0 = arith.constant 0 : index
    %0 = vector.load %arg1[%c0, %c0_0] : memref<64x32xf32, #tpu.memory_space<vmem>>, vector<8x32xf32>
    %c8 = arith.constant 8 : index
    %c0_1 = arith.constant 0 : index
    %1 = vector.load %arg1[%c8, %c0_1] : memref<64x32xf32, #tpu.memory_space<vmem>>, vector<56x4xf32>
    %2 = arith.truncf %0 : vector<8x32xf32> to vector<8x32xbf16>
    %3 = arith.truncf %1 : vector<56x4xf32> to vector<56x4xbf16>
    %c0_2 = arith.constant 0 : index
    %c0_3 = arith.constant 0 : index
    %4 = vector.load %arg0[%c0_2, %c0_3] : memref<2x56xi32, #tpu.memory_space<vmem>>, vector<1x56xi32>
    %c1 = arith.constant 1 : index
    %c0_4 = arith.constant 0 : index
    %5 = vector.load %arg0[%c1, %c0_4] : memref<2x56xi32, #tpu.memory_space<vmem>>, vector<1x56xi32>
    %c0_5 = arith.constant 0 : index
    %c0_6 = arith.constant 0 : index
    %6 = vector.load %arg2[%c0_5, %c0_6] : memref<64x128xbf16, #tpu.memory_space<vmem>>, vector<32x96xbf16>
    %cst = arith.constant dense<0.000000e+00> : vector<8x96xf32>
    %7 = tpu.matmul %2, %6, %cst {dimension_numbers = #tpu.dot_dimension_numbers<[1], [0], [0], [1], [0, 0, 1, 1], [], []>} : vector<8x32xbf16>, vector<32x96xbf16>, vector<8x96xf32> -> vector<8x96xf32>
    %8 = vector.extract_strided_slice %7 {offsets = [0, 0], sizes = [8, 32], strides = [1, 1]} : vector<8x96xf32> to vector<8x32xf32>
    %9 = vector.extract_strided_slice %7 {offsets = [0, 32], sizes = [8, 32], strides = [1, 1]} : vector<8x96xf32> to vector<8x32xf32>
    %10 = vector.extract_strided_slice %7 {offsets = [0, 64], sizes = [8, 32], strides = [1, 1]} : vector<8x96xf32> to vector<8x32xf32>
    %11 = tpu.iota {dimensions = array<i32: 0>} : vector<8x56xi32>
    %12 = vector.broadcast %4 : vector<1x56xi32> to vector<8x56xi32>
    %13 = arith.cmpi eq, %11, %12 : vector<8x56xi32>
    %14 = arith.extui %13 : vector<8x56xi1> to vector<8x56xi32>
    %15 = arith.sitofp %14 : vector<8x56xi32> to vector<8x56xf32>
    %16 = arith.truncf %15 : vector<8x56xf32> to vector<8x56xbf16>
    %17 = tpu.iota {dimensions = array<i32: 0>} : vector<16x56xi32>
    %c8_i32 = arith.constant 8 : i32
    %18 = vector.broadcast %c8_i32 : i32 to vector<16x56xi32>
    %19 = arith.cmpi slt, %17, %18 : vector<16x56xi32>
    %c8_i32_7 = arith.constant 8 : i32
    %20 = vector.broadcast %c8_i32_7 : i32 to vector<1x56xi32>
    %21 = arith.addi %5, %20 : vector<1x56xi32>
    %22 = vector.shape_cast %4 : vector<1x56xi32> to vector<1x56xi32>
    %23 = vector.broadcast %22 : vector<1x56xi32> to vector<16x56xi32>
    %24 = vector.shape_cast %21 : vector<1x56xi32> to vector<1x56xi32>
    %25 = vector.broadcast %24 : vector<1x56xi32> to vector<16x56xi32>
    %26 = arith.select %19, %23, %25 : vector<16x56xi1>, vector<16x56xi32>
    %27 = arith.cmpi eq, %17, %26 : vector<16x56xi32>
    %28 = arith.extui %27 : vector<16x56xi1> to vector<16x56xi32>
    %29 = arith.sitofp %28 : vector<16x56xi32> to vector<16x56xf32>
    %30 = arith.truncf %29 : vector<16x56xf32> to vector<16x56xbf16>
    %31 = tpu.concatenate %8, %9 in 0 : vector<8x32xf32>, vector<8x32xf32> -> vector<16x32xf32>
    %32 = arith.truncf %31 : vector<16x32xf32> to vector<16x32xbf16>
    %cst_8 = arith.constant dense<0.000000e+00> : vector<56x32xf32>
    %33 = tpu.matmul %30, %32, %cst_8 {dimension_numbers = #tpu.dot_dimension_numbers<[0], [0], [1], [1], [0, 1, 1, 1], [], []>} : vector<16x56xbf16>, vector<16x32xbf16>, vector<56x32xf32> -> vector<56x32xf32>
    %c0_9 = arith.constant 0 : index
    %c0_10 = arith.constant 0 : index
    %34 = vector.load %arg3[%c0_9, %c0_10] : memref<1x128xf32, #tpu.memory_space<vmem>>, vector<1x32xf32>
    %c0_11 = arith.constant 0 : index
    %c32 = arith.constant 32 : index
    %35 = vector.load %arg3[%c0_11, %c32] : memref<1x128xf32, #tpu.memory_space<vmem>>, vector<1x32xf32>
    %c0_12 = arith.constant 0 : index
    %c64 = arith.constant 64 : index
    %36 = vector.load %arg3[%c0_12, %c64] : memref<1x128xf32, #tpu.memory_space<vmem>>, vector<1x32xf32>
    %c0_13 = arith.constant 0 : index
    %c96 = arith.constant 96 : index
    %37 = vector.load %arg3[%c0_13, %c96] : memref<1x128xf32, #tpu.memory_space<vmem>>, vector<1x32xf32>
    %c32_14 = arith.constant 32 : index
    %c64_15 = arith.constant 64 : index
    %38 = vector.load %arg2[%c32_14, %c64_15] : memref<64x128xbf16, #tpu.memory_space<vmem>>, vector<4x32xbf16>
    %cst_16 = arith.constant dense<0.000000e+00> : vector<56x32xf32>
    %39 = tpu.matmul %3, %38, %cst_16 {dimension_numbers = #tpu.dot_dimension_numbers<[1], [0], [0], [1], [0, 0, 1, 1], [], []>} : vector<56x4xbf16>, vector<4x32xbf16>, vector<56x32xf32> -> vector<56x32xf32>
    %40 = arith.addf %33, %39 : vector<56x32xf32>
    %41 = vector.broadcast %34 : vector<1x32xf32> to vector<56x32xf32>
    %42 = arith.addf %40, %41 : vector<56x32xf32>
    %cst_17 = arith.constant 0.000000e+00 : f32
    %43 = vector.broadcast %cst_17 : f32 to vector<56x32xf32>
    %44 = arith.maximumf %42, %43 : vector<56x32xf32>
    %c0_18 = arith.constant 0 : index
    %c96_19 = arith.constant 96 : index
    %45 = vector.load %arg2[%c0_18, %c96_19] : memref<64x128xbf16, #tpu.memory_space<vmem>>, vector<32x32xbf16>
    %46 = arith.truncf %44 : vector<56x32xf32> to vector<56x32xbf16>
    %cst_20 = arith.constant dense<0.000000e+00> : vector<56x32xf32>
    %47 = tpu.matmul %46, %45, %cst_20 {dimension_numbers = #tpu.dot_dimension_numbers<[1], [0], [0], [1], [0, 0, 1, 1], [], []>} : vector<56x32xbf16>, vector<32x32xbf16>, vector<56x32xf32> -> vector<56x32xf32>
    %48 = vector.broadcast %35 : vector<1x32xf32> to vector<56x32xf32>
    %49 = arith.addf %47, %48 : vector<56x32xf32>
    %cst_21 = arith.constant 0.000000e+00 : f32
    %50 = vector.broadcast %cst_21 : f32 to vector<56x32xf32>
    %51 = arith.maximumf %49, %50 : vector<56x32xf32>
    %52 = arith.truncf %51 : vector<56x32xf32> to vector<56x32xbf16>
    %cst_22 = arith.constant dense<0.000000e+00> : vector<8x32xf32>
    %53 = tpu.matmul %16, %52, %cst_22 {dimension_numbers = #tpu.dot_dimension_numbers<[1], [0], [0], [1], [0, 0, 1, 1], [], []>} : vector<8x56xbf16>, vector<56x32xbf16>, vector<8x32xf32> -> vector<8x32xf32>
    %c32_23 = arith.constant 32 : index
    %c0_24 = arith.constant 0 : index
    %54 = vector.load %arg2[%c32_23, %c0_24] : memref<64x128xbf16, #tpu.memory_space<vmem>>, vector<32x32xbf16>
    %55 = arith.truncf %53 : vector<8x32xf32> to vector<8x32xbf16>
    %cst_25 = arith.constant dense<0.000000e+00> : vector<8x32xf32>
    %56 = tpu.matmul %55, %54, %cst_25 {dimension_numbers = #tpu.dot_dimension_numbers<[1], [0], [0], [1], [0, 0, 1, 1], [], []>} : vector<8x32xbf16>, vector<32x32xbf16>, vector<8x32xf32> -> vector<8x32xf32>
    %57 = arith.addf %10, %56 : vector<8x32xf32>
    %58 = vector.broadcast %36 : vector<1x32xf32> to vector<8x32xf32>
    %59 = arith.addf %57, %58 : vector<8x32xf32>
    %cst_26 = arith.constant 0.000000e+00 : f32
    %60 = vector.broadcast %cst_26 : f32 to vector<8x32xf32>
    %61 = arith.maximumf %59, %60 : vector<8x32xf32>
    %c32_27 = arith.constant 32 : index
    %c32_28 = arith.constant 32 : index
    %62 = vector.load %arg2[%c32_27, %c32_28] : memref<64x128xbf16, #tpu.memory_space<vmem>>, vector<32x32xbf16>
    %63 = arith.truncf %61 : vector<8x32xf32> to vector<8x32xbf16>
    %cst_29 = arith.constant dense<0.000000e+00> : vector<8x32xf32>
    %64 = tpu.matmul %63, %62, %cst_29 {dimension_numbers = #tpu.dot_dimension_numbers<[1], [0], [0], [1], [0, 0, 1, 1], [], []>} : vector<8x32xbf16>, vector<32x32xbf16>, vector<8x32xf32> -> vector<8x32xf32>
    %65 = vector.broadcast %37 : vector<1x32xf32> to vector<8x32xf32>
    %66 = arith.addf %64, %65 : vector<8x32xf32>
    %67 = arith.addf %66, %0 : vector<8x32xf32>
    %c0_30 = arith.constant 0 : index
    %c0_31 = arith.constant 0 : index
    %68 = vector.load %arg4[%c0_30, %c0_31] : memref<8x32xf32, #tpu.memory_space<vmem>>, vector<8x32xf32>
    tpu.vector_store %arg4[%c0_30, %c0_31], %67 {strides = array<i32>} : memref<8x32xf32, #tpu.memory_space<vmem>>, vector<8x32xf32>,
    %c0_32 = arith.constant 0 : index
    %c0_33 = arith.constant 0 : index
    %69 = vector.load %arg5[%c0_32, %c0_33] : memref<56x32xf32, #tpu.memory_space<vmem>>, vector<56x32xf32>
    tpu.vector_store %arg5[%c0_32, %c0_33], %51 {strides = array<i32>} : memref<56x32xf32, #tpu.memory_space<vmem>>, vector<56x32xf32>,
    return
  }
}

</mosaic_0001>

<bundles_post_ra>
// kernel: gcl_forward.1
= control target key start
LH: loop header
LB: loop body
LE: loop exit
PB: predicated region body
PF: predicated region fallthrough
CT: control target
= control target key end

     0   :  { %v792_v1 = vmov 0.0   ;;  %vm793_vm0 = vmmov 0   ;;  %s794_s26 = smov 64   ;;  %s993_s0 = inlined_call_operand.vmem [shape: s32[2,56], index: 0, kind: input, shape index: {}]   ;;  %s994_s1 = inlined_call_operand.vmem [shape: f32[64,32], index: 1, kind: input, shape index: {}]   ;;  %s995_s2 = inlined_call_operand.vmem [shape: bf16[64,128], index: 2, kind: input, shape index: {}]   ;;  %s996_s3 = inlined_call_operand.vmem [shape: f32[1,128], index: 3, kind: input, shape index: {}]   ;;  %s997_s4 = inlined_call_operand.hbm [shape: f32[8,32], index: 4, kind: output, shape index: {0}]   ;;  %s998_s5 = inlined_call_operand.vmem [shape: f32[56,32], index: 5, kind: output, shape index: {1}]  }
   0x1   :  { %v763_v0 = vld [vmem:[%s995_s2] sm:$0xff]   ;;  %683 = vmatprep.subr.bf16.mxu0 %v792_v1  ;;  %v764_v2 = vld [vmem:[%s995_s2 + $0x8] sm:$0xff]   ;;  %687 = vmatprep.mubr.msk.bf16.mxu0 %vm793_vm0, %v792_v1  ;;  %v765_v4 = vld [vmem:[%s995_s2 + $0x10] ss:$0 sps:$4 sm:$0x33]  }
   0x2   :  { %684 = vmatpush3.bf16.msra.mxu0 %v763_v0  ;;  %v840_v3 = vld [vmem:[%s994_s1] sm:$0xff]  ;;  %133 = vrot.lane.b32.xlu0 %v765_v4, %s794_s26 }
   0x3   :  { %685 = vmatprep.subr.bf16.mxu0 %v792_v1  ;;  %v29_v5 = vpack.c.bf16 %v840_v3, %v840_v3 }
   0x4   :  { %11 = vsyncpa [#allocation3], 0  ;;  %vm52_vm1 = vcmask 261120   ;;  %v35_v6 = vld [vmem:[%s993_s0 + $0x1] sm:$0x1]  ;;  %v96_v7 = vlaneseq  ;;  %v22_v8 = vld [vmem:[%s994_s1 + $0x8] sm:$0xff] }
   0x5   :  { %v630_v9 = vld [vmem:[%s993_s0] ss:$0 sm:$0xff]  ;;  %v23_v10 = vld [vmem:[%s994_s1 + $0x10] sm:$0xff]  ;;  %vm135_vm2 = vcmask 31744   ;;  %v109_v12 = vadd.s32 8, %v35_v6  ;;  %vm148_vm5 = vcmask 1041408  }
   0x6   :  { %686 = vmatpush3.bf16.msra.mxu0 %v764_v2  ;;  %v97_v11 = vshrl.u32 %v96_v7, 7  ;;  %v30_v13 = vpack.c.bf16 %v23_v10, %v22_v8  ;;  %v24_v20 = vld [vmem:[%s994_s1 + $0x18] sm:$0xff]  ;;  %v25_v21 = vld [vmem:[%s994_s1 + $0x20] sm:$0xff]  ;;  %v26_v22 = vld [vmem:[%s994_s1 + $0x28] sm:$0xff]  ;;  %vm232_vm6 = vcmask 130048   ;;  %s795_s19 = smov 96  }
   0x7   :  { %v27_v23 = vld [vmem:[%s994_s1 + $0x30] sm:$0xff]  ;;  %v31_v26 = vpack.c.bf16 %v25_v21, %v24_v20  ;;  %v28_v28 = vld [vmem:[%s994_s1 + $0x38] sm:$0xff]  ;;  %s796_s20 = smov 32   ;;  %v896_v35 = vld [vmem:[%s996_s3] ss:$0 sm:$0xff]  ;;  %vm433_vm7 = vcmask 1043456  }
   0x8   :  { %vm102_vm3 = vcmp.eq.s32.totalorder %v97_v11, %v630_v9  ;;  %v106_v14 = vadd.s32 8, %v97_v11  ;;  %v112_v15 = vsub.s32 0, %v97_v11  ;;  %693 = vmatprep.mubr.msk.bf16.mxu1 %vm135_vm2, %v30_v13  ;;  %v32_v27 = vpack.c.bf16 %v27_v23, %v26_v22 }
   0x9   :  { %688 = vmatmul.mubr.msk.bf16.vlgmr.msra.gmra.mrb[0].mxu0 %vm52_vm1, %v29_v5  ;;  %v864_v17 = vsel %vm102_vm3, 1.0, %v792_v1  ;;  %v33_v29 = vpack.c.bf16 %v28_v28, %v28_v28  ;;  %vm429_vm8 = vcmask 457728  }
   0xa   :  { %v113_v16 = vrot.slane %v109_v12, %v112_v15 }
   0xc   :  { %vm117_vm4 = vcmp.eq.s32.totalorder %v106_v14, %v113_v16  ;;  %v924_v14 = vld [vmem:[%s995_s2 + $0x10] sm:$0xff]  }
   0xd   :  { %v633_v18 = vsel %vm117_vm4, 1.0, %v792_v1 }
   0xe   :  { %v122_v19 = vpack.c.bf16 %v633_v18, %v864_v17 }
  0x10   :  { %216 = vxpose.xlu1.c.b16.start.end [1/1] (short) (narrow) %v122_v19, 64 }
  0x20   :  { %333 = vrot.lane.b32.xlu1 %v763_v0, %s796_s20 }
  0x74   :  { %v134_v24 = vpop.permute.xlu0 %133 }
  0x75   :  { %755 = vmatprep.subr.msk.bf16.mxu1 %vm148_vm5, %v134_v24  ;;  %v150_v25 = vsel %vm148_vm5, %v134_v24, 0 }
  0x76   :  { %692 = vmatpush3.bf16.msra.mxu1 %v150_v25  ;;  %v224_v30 = vpop.trf.xlu1 }
  0x79   :  { %694 = vmatmul.mubr.msk.bf16.vlgmr.msra.gmra.mrb[0].mxu1 %vm135_vm2, %v31_v26 }
  0x7a   :  { %697 = vmatprep.mubr.msk.bf16.mxu1 %vm135_vm2, %v32_v27  ;;  %v225_v36 = vpop.trf.xlu1 }
  0x7e   :  { %v226_v39 = vpop.trf.xlu1 }
  0x81   :  { %698 = vmatmul.mubr.msk.bf16.gmra.mrb[4].mxu1 %vm135_vm2, %v33_v29 }
  0x82   :  { %703 = vmatprep.mubr.msk.bf16.mxu1 %vm232_vm6, %v224_v30  ;;  %v227_v44 = vpop.trf.xlu1 }
  0x92   :  { %v334_v45 = vpop.permute.xlu1 %333 }
  0x93   :  { %711 = vmatprep.subr.bf16.mxu0 %v334_v45 }
  0x94   :  { %712 = vmatpush3.bf16.msra.mxu0 %v334_v45  ;;  %v105_v45 = vpack.c.bf16 %v864_v17, %v864_v17 }
  0xdc   :  { %v887_v31 = vpop.f32.mrb[0].mxu0 }
  0xdd   :  { %124 = vrot.lane.b32.xlu0 %v887_v31, %s795_s19  ;;  %v689_v32 = vpop.f32.mrb[1].mxu0 }
  0xde   :  { %v93_v33 = vpop.f32.mrb[2].mxu0 }
  0xdf   :  { %v690_v34 = vpop.f32.mrb[3].mxu0 }
  0xe1   :  { %335 = vrot.lane.b32.xlu0 %v764_v2, %s796_s20 }
  0xe5   :  { %339 = vrot.lane.b32.xlu0 %v896_v35, %s795_s19 }
 0x14f   :  { %v125_v37 = vpop.permute.xlu0 %124 }
 0x150   :  { %v127_v38 = vpack.c.bf16 %v125_v37, %v887_v31 }
 0x152   :  { %701 = vmatprep.subr.bf16.mxu1 %v127_v38 }
 0x153   :  { %702 = vmatpush3.bf16.msra.mxu1 %v127_v38  ;;  %v336_v46 = vpop.permute.xlu0 %335 }
 0x154   :  { %735 = vmatprep.subr.bf16.mxu1 %v792_v1  ;;  %v699_v40 = vpop.f32.mrb[4].mxu1  ;;  %713 = vmatprep.subr.bf16.mxu0 %v336_v46 }
 0x155   :  { %v202_v41 = vpop.f32.mrb[5].mxu1  ;;  %714 = vmatpush3.bf16.msra.mxu0 %v336_v46 }
 0x156   :  { %704 = vmatmul.mubr.msk.bf16.vlgmr.msra.gmra.mrb[0].mxu1 %vm232_vm6, %v225_v36  ;;  %v700_v42 = vpop.f32.mrb[6].mxu1  ;;  %723 = vmatprep.subr.bf16.mxu0 %v792_v1 }
 0x157   :  { %707 = vmatprep.mubr.msk.bf16.mxu1 %vm232_vm6, %v226_v39  ;;  %v205_v43 = vpop.f32.mrb[7].mxu1  ;;  %736 = vmatpush3.bf16.msra.mxu1 %v924_v14  ;;  %v340_v15 = vpop.permute.xlu0 %339 }
 0x158   :  { %737 = vmatprep.subr.bf16.mxu1 %v792_v1 }
 0x15e   :  { %708 = vmatmul.mubr.msk.bf16.gmra.mrb[8].mxu1 %vm232_vm6, %v227_v44 }
 0x15f   :  { %739 = vmatprep.mubr.msk.bf16.mxu1 %vm793_vm0, %v792_v1 }
 0x229   :  { %v705_v47 = vpop.f32.mrb[0].mxu1 }
 0x22a   :  { %v317_v48 = vadd.f32 %v705_v47, %v896_v35  ;;  %v279_v49 = vpop.f32.mrb[1].mxu1  ;;  %v767_v47 = vld [vmem:[%s995_s2 + $0x18] sm:$0xff]   ;;  %s797_s2 = smov [#allocation2]  }
 0x22b   :  { %v315_v50 = vadd.f32 %v896_v35, %v279_v49  ;;  %v706_v51 = vpop.f32.mrb[2].mxu1  ;;  %738 = vmatpush3.bf16.msra.mxu1 %v767_v47  ;;  %550 = vrot.lane.b32.xlu1 %v767_v47, %s795_s19 }
 0x22c   :  { %v318_v52 = vadd.f32 %v706_v51, %v896_v35  ;;  %v282_v53 = vpop.f32.mrb[3].mxu1  ;;  %v324_v55 = vmax.f32 %v317_v48, 0.0 }
 0x22d   :  { %v316_v54 = vadd.f32 %v896_v35, %v282_v53  ;;  %v322_v57 = vmax.f32 %v315_v50, 0.0 }
 0x22e   :  { %v325_v56 = vmax.f32 %v318_v52, 0.0 }
 0x22f   :  { %v323_v58 = vmax.f32 %v316_v54, 0.0  ;;  %554 = vrot.lane.b32.xlu1 %v896_v35, %s796_s20 }
 0x230   :  { %v330_v59 = vpack.c.bf16 %v325_v56, %v324_v55 }
 0x231   :  { %v329_v60 = vpack.c.bf16 %v323_v58, %v322_v57  ;;  %v709_v61 = vpop.f32.mrb[8].mxu1 }
 0x232   :  { %v304_v62 = vadd.f32 %v709_v61, %v699_v40  ;;  %v295_v63 = vpop.f32.mrb[9].mxu1 }
 0x233   :  { %v296_v0 = vadd.f32 %v295_v63, %v202_v41  ;;  %v710_v2 = vpop.f32.mrb[10].mxu1  ;;  %715 = vmatprep.mubr.msk.bf16.mxu0 %vm52_vm1, %v329_v60 }
 0x234   :  { %v321_v4 = vadd.f32 %v896_v35, %v304_v62  ;;  %v298_v5 = vpop.f32.mrb[11].mxu1  ;;  %716 = vmatmul.mubr.msk.bf16.vlgmr.msra.gmra.mrb[4].mxu0 %vm52_vm1, %v330_v59 }
 0x235   :  { %v319_v6 = vadd.f32 %v896_v35, %v296_v0  ;;  %v299_v7 = vadd.f32 %v298_v5, %v205_v43 }
 0x236   :  { %v328_v9 = vmax.f32 %v321_v4, 0.0 }
 0x237   :  { %v320_v8 = vadd.f32 %v896_v35, %v299_v7  ;;  %v326_v10 = vmax.f32 %v319_v6, 0.0 }
 0x238   :  { %v332_v13 = vpack.c.bf16 %v328_v9, %v328_v9 }
 0x239   :  { %v327_v11 = vmax.f32 %v320_v8, 0.0 }
 0x23b   :  { %v331_v12 = vpack.c.bf16 %v327_v11, %v326_v10 }
 0x23d   :  { %719 = vmatprep.mubr.msk.bf16.mxu0 %vm52_vm1, %v331_v12 }
 0x23e   :  { %720 = vmatmul.mubr.msk.bf16.gmra.mrb[8].mxu0 %vm52_vm1, %v332_v13 }
 0x23f   :  { %731 = vmatprep.mubr.msk.bf16.mxu0 %vm793_vm0, %v792_v1 }
 0x29d   :  { %v551_v61 = vpop.permute.xlu1 %550 }
 0x2a1   :  { %v555_v0 = vpop.permute.xlu1 %554 }
 0x307   :  { %v717_v16 = vpop.f32.mrb[4].mxu0 }
 0x308   :  { %v397_v18 = vadd.f32 %v717_v16, %v340_v15  ;;  %v388_v19 = vpop.f32.mrb[5].mxu0 }
 0x309   :  { %v389_v20 = vadd.f32 %v388_v19, %v340_v15  ;;  %v718_v21 = vpop.f32.mrb[6].mxu0 }
 0x30a   :  { %v420_v22 = vmax.f32 %v397_v18, 0.0  ;;  %v400_v23 = vadd.f32 %v718_v21, %v340_v15  ;;  %v391_v24 = vpop.f32.mrb[7].mxu0 }
 0x30b   :  { %v418_v25 = vmax.f32 %v389_v20, 0.0  ;;  %v392_v26 = vadd.f32 %v391_v24, %v340_v15 }
 0x30c   :  { %604 = vst.msk [vmem:[%s998_s5 + $0x10] sm:$0xff] %vm52_vm1, %v420_v22  ;;  %v421_v27 = vmax.f32 %v400_v23, 0.0 }
 0x30d   :  { %602 = vst.msk [vmem:[%s998_s5] sm:$0xff] %vm52_vm1, %v418_v25  ;;  %v419_v28 = vmax.f32 %v392_v26, 0.0 }
 0x30e   :  { %v426_v29 = vpack.c.bf16 %v421_v27, %v420_v22  ;;  %605 = vst.msk [vmem:[%s998_s5 + $0x18] sm:$0xff] %vm52_vm1, %v421_v27 }
 0x30f   :  { %v425_v30 = vpack.c.bf16 %v419_v28, %v418_v25  ;;  %603 = vst.msk [vmem:[%s998_s5 + $0x8] sm:$0xff] %vm52_vm1, %v419_v28 }
 0x311   :  { %v721_v32 = vpop.f32.mrb[8].mxu0  ;;  %724 = vmatpush3.bf16.msra.mxu0 %v425_v30 }
 0x312   :  { %v413_v33 = vadd.f32 %v721_v32, %v340_v15  ;;  %v404_v34 = vpop.f32.mrb[9].mxu0  ;;  %725 = vmatprep.subr.bf16.mxu0 %v792_v1 }
 0x313   :  { %v405_v36 = vadd.f32 %v404_v34, %v340_v15  ;;  %v722_v37 = vpop.f32.mrb[10].mxu0 }
 0x314   :  { %v424_v38 = vmax.f32 %v413_v33, 0.0  ;;  %v407_v39 = vpop.f32.mrb[11].mxu0 }
 0x315   :  { %v422_v40 = vmax.f32 %v405_v36, 0.0  ;;  %v408_v41 = vadd.f32 %v407_v39, %v340_v15  ;;  %726 = vmatpush3.bf16.msra.mxu0 %v426_v29 }
 0x316   :  { %608 = vst.msk [vmem:[%s998_s5 + $0x30] sm:$0xff] %vm52_vm1, %v424_v38  ;;  %727 = vmatprep.subr.bf16.mxu0 %v792_v1  ;;  %v428_v44 = vpack.c.bf16 %v424_v38, %v424_v38 }
 0x317   :  { %606 = vst.msk [vmem:[%s998_s5 + $0x20] sm:$0xff] %vm52_vm1, %v422_v40  ;;  %v423_v42 = vmax.f32 %v408_v41, 0.0 }
 0x318   :  { %v435_v46 = vsel %vm433_vm7, %v428_v44, 0 }
 0x319   :  { %v427_v43 = vpack.c.bf16 %v423_v42, %v422_v40  ;;  %607 = vst.msk [vmem:[%s998_s5 + $0x28] sm:$0xff] %vm52_vm1, %v423_v42  ;;  %s615_s5 = sshll.u32 %s797_s2, 4  ;;  %s616_s5 = int_to_ptr.vmem [resolvable:$true] %s615_s5 }
 0x31a   :  { %s768_s14 = scalar_lea.vmem %s616_s5, 128  ;;  %p773_p1 = scmp.lt.s32.totalorder %s616_s5, %s616_s5 }
 0x31b   :  { %728 = vmatpush3.bf16.msra.mxu0 %v427_v43  ;;  %p769_p0 = scmp.ne.s32.totalorder %s616_s5, %s768_s14  ;;  %p774_p2 = scmp.lt.s32.totalorder %s768_s14, %s768_s14 }
 0x31c   :  { %729 = vmatprep.subr.bf16.mxu0 %v792_v1 }
 0x31d   :  { %p775_p3 = por %p774_p2, %p773_p1 }
 0x31f   :  { %730 = vmatpush3.bf16.msra.mxu0 %v435_v46  ;;  %p776_p4 = pnand %p775_p3, %p769_p0 }
 0x320   :  { %743 = vmatprep.subr.bf16.mxu0 %v792_v1 }
 0x322   :  { %732 = vmatmul.mubr.msk.bf16.vlgmr.msra.gmra.mrb[12].mxu0 %vm429_vm8, %v105_v45 }
 0x323   :  { %747 = vmatprep.mubr.msk.bf16.mxu0 %vm793_vm0, %v792_v1 }
 0x3f5   :  { %v471_v17 = vpop.f32.mrb[12].mxu0 }
 0x3f6   :  { %v481_v48 = vpack.c.bf16 %v471_v17, %v471_v17  ;;  %v733_v49 = vpop.f32.mrb[13].mxu0 }
 0x3f7   :  { %v474_v50 = vpop.f32.mrb[14].mxu0 }
 0x3f8   :  { %740 = vmatmul.mubr.msk.bf16.vlgmr.msra.gmra.mrb[12].mxu1 %vm52_vm1, %v481_v48  ;;  %v734_v51 = vpop.f32.mrb[15].mxu0 }
 0x4cb   :  { %v531_v52 = vpop.f32.mrb[12].mxu1 }
 0x4cc   :  { %538 = vrot.lane.b32.xlu0 %v531_v52, %s794_s26  ;;  %v741_v53 = vpop.f32.mrb[13].mxu1 }
 0x4cd   :  { %v534_v54 = vpop.f32.mrb[14].mxu1 }
 0x4ce   :  { %v742_v55 = vpop.f32.mrb[15].mxu1 }
 0x4d0   :  { %548 = vrot.lane.b32.xlu0 %v924_v14, %s795_s19 }
 0x53e   :  { %v539_v56 = vpop.permute.xlu0 %538 }
 0x53f   :  { %v541_v57 = vadd.f32 %v539_v56, %v887_v31 }
 0x541   :  { %v542_v58 = vadd.f32 %v896_v35, %v541_v57 }
 0x542   :  { %v549_v59 = vpop.permute.xlu0 %548 }
 0x543   :  { %v543_v60 = vmax.f32 %v542_v58, 0.0  ;;  %744 = vmatpush3.bf16.msra.mxu0 %v549_v59 }
 0x544   :  { %745 = vmatprep.subr.bf16.mxu0 %v792_v1 }
 0x545   :  { %v544_v62 = vpack.c.bf16 %v543_v60, %v543_v60 }
 0x547   :  { %546 = vrot.lane.b32.xlu0 %v544_v62, %s794_s26  ;;  %746 = vmatpush3.bf16.msra.mxu0 %v551_v61 }
 0x5b9   :  { %v547_v63 = vpop.permute.xlu0 %546 }
 0x5ba   :  { %748 = vmatmul.mubr.msk.bf16.vlgmr.msra.gmra.mrb[16].mxu0 %vm52_vm1, %v547_v63 }
 0x68d   :  { %v594_v2 = vpop.f32.mrb[16].mxu0 }
 0x68e   :  { %v595_v31 = vadd.f32 %v594_v2, %v555_v0  ;;  %v749_v4 = vpop.f32.mrb[17].mxu0 }
 0x68f   :  { %v597_v35 = vpop.f32.mrb[18].mxu0 }
 0x690   :  { %v600_v5 = vadd.f32 %v595_v31, %v840_v3  ;;  %v750_v6 = vpop.f32.mrb[19].mxu0 }
 0x692   :  { %601 = vst.msk [vmem:[#allocation2] sm:$0xff] %vm52_vm1, %v600_v5 }
 0x693   :  { %779 = shalt.err (!%p776_p4)
}
 0x694   :  { %s780_s16 = scalar_lea.hbm %s997_s4, 128 }
 0x695   :  { %p781_p5 = scmp.ne.s32.totalorder %s997_s4, %s780_s16  ;;  %p784_p6 = scmp.lt.u32.totalorder %s780_s16, %s997_s4 }
 0x697   :  { %p786_p7 = pnand %p784_p6, %p781_p5 }
 0x699   :  { %789 = shalt.err (!%p786_p7)
}
 0x69a   :  { %618 = dma.vmem_to_hbm [thread:$0]  %s616_s5, 128, %s997_s4, [#allocation3]  }
 0x69b   :  { %790 = dma.done.wait [#allocation3], 128  }
 0x69c   :  { %791 = vsyncadd [#allocation3], 4294967168 }
 0x69d   :  { %626 = vsyncpa [#allocation3], 1 }

</bundles_post_ra>
